<compile_context>
chip_gen: v7x
topology: tpu7x:2x2x1
jax: 0.10.0
libtpu: 0.0.40
codegen_flags: <defaults>
</compile_context>

<pallas_src>
import functools
import math

import jax
import jax.numpy as jnp
import numpy as np
from jax import lax
from jax.experimental import pallas as pl
from jax.experimental.pallas import tpu as pltpu

_MIB = 1024 * 1024


def _vmem_budget_bytes():
    """Per-chip VMEM budget used to size the row tile (conservative fallback)."""
    try:
        cap = pltpu.get_tpu_info().vmem_capacity_bytes
    except Exception:  # interpret mode / query unavailable
        cap = 64 * _MIB  # v7x has the smallest VMEM per TensorCore
    return int(cap * 0.6)  # headroom for Mosaic scratch + pipelining


def _choose_row_tile(n, c, elt_bytes, budget_bytes):
    """Largest 128-multiple query-row tile that divides N and fits the budget."""
    if n <= 512:
        return n  # single tile, no lane slicing at all
    input_bytes = 2 * 2 * c * n * elt_bytes  # 2 inputs x double buffer
    divisors = [d for d in (1024, 512, 256, 128) if n % d == 0]
    if not divisors:
        # Non-128-aligned N: fall back to the largest divisor <= 512.
        best = 1
        for d in range(1, 513):
            if n % d == 0:
                best = d
        return best
    for cand in divisors:  # largest first
        temps = 6 * cand * n * 4  # ~6 live (tq, N) f32 slabs in the body
        if input_bytes + temps <= budget_bytes:
            return cand
    return divisors[-1]


def _pixel_pair_kernel(s_ref, t_ref, o_ref, *, row_tile, n_cols):
    """One (batch b, query-row-tile q) step of the pixel-pair KL loss.

    s_ref / t_ref : (1, C, N) pooled, L2-normalized, 1/sqrt(T)-scaled features
                    (channels on sublanes, pixels on the 128-lane axis).
    o_ref         : (1, 1, 8, 128) f32 partial-sum slab for this (b, q) step.
    """
    q_idx = pl.program_id(1)

    fs_all = s_ref[0]  # (C, N) in the MXU operand dtype
    ft_all = t_ref[0]

    if row_tile == n_cols:  # static: single query tile
        fs_q, ft_q = fs_all, ft_all
    else:
        start = pl.multiple_of(q_idx * row_tile, row_tile)  # 128-aligned lane slice
        fs_q = s_ref[0, :, pl.ds(start, row_tile)]  # (C, tq)
        ft_q = t_ref[0, :, pl.ds(start, row_tile)]

    # (C, tq)^T @ (C, N) -> (tq, N): contract on dim 0 of both operands — the
    # MXU-native transposed-LHS orientation, no materialized transpose.
    dn = (((0,), (0,)), ((), ()))
    s_sim = lax.dot_general(fs_q, fs_all, dn, preferred_element_type=jnp.float32)
    t_sim = lax.dot_general(ft_q, ft_all, dn, preferred_element_type=jnp.float32)
    # 1/temperature is already folded into the feature scaling.

    # Exact row softmax statistics over the full key dim (so tiling is exact).
    s_max = jnp.max(s_sim, axis=-1, keepdims=True)
    t_max = jnp.max(t_sim, axis=-1, keepdims=True)
    s_shift = s_sim - s_max
    t_shift = t_sim - t_max

    s_den = jnp.sum(jnp.exp(s_shift), axis=-1, keepdims=True)  # (tq, 1)
    t_exp = jnp.exp(t_shift)                                   # (tq, N)
    t_den = jnp.sum(t_exp, axis=-1, keepdims=True)             # (tq, 1)
    cross = jnp.sum(t_exp * (t_shift - s_shift), axis=-1, keepdims=True)

    # Fused per-row KL:
    #   sum_j p_t (log p_t - log p_s) = cross / t_den + log(s_den) - log(t_den)
    # Exact divide: t_den is a tiny (tq, 1) column, essentially free.
    kl_rows = cross / t_den + jnp.log(s_den) - jnp.log(t_den)  # (tq, 1)
    kl = jnp.sum(kl_rows)  # scalar partial for this (b, q)

    o_ref[...] = jnp.full(o_ref.shape, kl, o_ref.dtype)


def criterion_pixel_pair(feat_S, feat_T, temperature=0.1,
                         matmul_dtype=jnp.bfloat16):
    """JAX/Pallas equivalent of CriterionPixelPair.forward (NCHW inputs)."""
    B, C, H, W = feat_S.shape
    # TODO(synk): odd H/W (ceil_mode AvgPool padding) unsupported; even dims only.
    assert H % 2 == 0 and W % 2 == 0, "even spatial dims assumed"

    Hp, Wp = H // 2, W // 2
    N = Hp * Wp
    eps2 = 1e-24  # == (F.normalize eps 1e-12)**2
    scale = 1.0 / math.sqrt(float(temperature))  # fold 1/T into the features

    def pool_norm_scale(x):
        # AvgPool2d(2,2,ceil_mode) + F.normalize(dim=1) + sqrt(1/T) scale + cast,
        # fused by XLA into one elementwise pass; output is channels-first (B,C,N)
        # so N sits on the 128-lane axis inside the kernel.
        x = x.astype(jnp.float32)
        x = x.reshape(B, C, Hp, 2, Wp, 2).mean(axis=(3, 5)).reshape(B, C, N)
        ss = jnp.sum(x * x, axis=1, keepdims=True)
        x = x * jax.lax.rsqrt(jnp.maximum(ss, eps2)) * scale
        return x.astype(matmul_dtype)

    s = pool_norm_scale(feat_S)
    t = pool_norm_scale(feat_T)

    elt = np.dtype(matmul_dtype).itemsize
    row_tile = _choose_row_tile(N, C, elt, _vmem_budget_bytes())
    num_tiles = N // row_tile
    assert row_tile * num_tiles == N

    est = 2 * 2 * C * N * elt + 6 * row_tile * N * 4 + 2 * 8 * 128 * 4
    vmem_limit = int(min(max(2 * est, 32 * _MIB), 64 * _MIB))

    kernel = functools.partial(_pixel_pair_kernel, row_tile=row_tile, n_cols=N)

    partials = pl.pallas_call(
        kernel,
        out_shape=jax.ShapeDtypeStruct((B, num_tiles, 8, 128), jnp.float32),
        grid_spec=pltpu.PrefetchScalarGridSpec(
            num_scalar_prefetch=0,
            grid=(B, num_tiles),
            in_specs=[
                pl.BlockSpec((1, C, N), lambda b, q: (b, 0, 0)),
                pl.BlockSpec((1, C, N), lambda b, q: (b, 0, 0)),
            ],
            out_specs=pl.BlockSpec((1, 1, 8, 128), lambda b, q: (b, q, 0, 0)),
        ),
        compiler_params=pltpu.CompilerParams(
            # No resident accumulator -> every grid step is independent, so both
            # axes are "parallel" (v7x megacore shards row tiles even when B == 1).
            dimension_semantics=("parallel", "parallel"),
            vmem_limit_bytes=vmem_limit,
        ),
        cost_estimate=pl.CostEstimate(
            flops=4 * B * N * N * C,
            transcendentals=2 * B * N * N + 2 * B * N,
            bytes_accessed=2 * B * C * N * elt + B * num_tiles * 8 * 128 * 4,
        ),
    )(s, t)

    # kl_div 'batchmean' divides by the number of rows (N); then mean over B.
    return jnp.sum(partials[:, :, 0, 0]) / (N * B)


def _reference_loss(feat_S, feat_T, temperature=0.1):
    """Pure-JAX reference mirroring the PyTorch module."""
    B, C, H, W = feat_S.shape

    def pool(x):
        return x.reshape(B, C, H // 2, 2, W // 2, 2).mean(axis=(3, 5))

    sp = pool(feat_S)
    tp = pool(feat_T)
    eps = 1e-12
    sn = sp / jnp.maximum(jnp.linalg.norm(sp, axis=1, keepdims=True), eps)
    tn = tp / jnp.maximum(jnp.linalg.norm(tp, axis=1, keepdims=True), eps)

    N = (H // 2) * (W // 2)
    loss = 0.0
    for i in range(B):
        fs = sn[i].reshape(C, N).T
        ft = tn[i].reshape(C, N).T
        s_sim = fs @ fs.T / temperature
        t_sim = ft @ ft.T / temperature
        log_p_s = jax.nn.log_softmax(s_sim, axis=1)
        p_t = jax.nn.softmax(t_sim, axis=1)
        log_p_t = jax.nn.log_softmax(t_sim, axis=1)
        loss = loss + jnp.sum(p_t * (log_p_t - log_p_s)) / N
    return loss / B


if __name__ == "__main__":
    key = jax.random.PRNGKey(0)
    k1, k2 = jax.random.split(key)
    B, C, H, W = 2, 4, 16, 16
    feat_S = jax.random.normal(k1, (B, C, H, W), dtype=jnp.float32)
    feat_T = jax.random.normal(k2, (B, C, H, W), dtype=jnp.float32)

    ref = jax.block_until_ready(_reference_loss(feat_S, feat_T, temperature=0.1))

    # Exact path (f32 MXU operands): tight check against the reference.
    loss_f32 = jax.jit(functools.partial(
        criterion_pixel_pair, temperature=0.1, matmul_dtype=jnp.float32))
    out_f32 = jax.block_until_ready(loss_f32(feat_S, feat_T))
    np.testing.assert_allclose(np.asarray(out_f32), np.asarray(ref),
                               rtol=1e-3, atol=1e-5)

    # Default fast path (bf16 MXU operands): 1/temperature = 10 amplifies bf16
    # logit quantization, so the tolerance is correspondingly looser.
    loss_bf16 = jax.jit(functools.partial(criterion_pixel_pair, temperature=0.1))
    out_bf16 = jax.block_until_ready(loss_bf16(feat_S, feat_T))
    np.testing.assert_allclose(np.asarray(out_bf16), np.asarray(ref),
                               rtol=1e-1, atol=1e-1)

    print("KERNEL_OK")
</pallas_src>

<mosaic_0001>
module attributes {stable_mosaic.version = 11 : i64} {
  func.func @_pixel_pair_kernel(%arg0: i32, %arg1: i32, %arg2: memref<1x4x64xf32, #tpu.memory_space<vmem>>, %arg3: memref<1x4x64xf32, #tpu.memory_space<vmem>>, %arg4: memref<1x1x8x128xf32, #tpu.memory_space<vmem>>) attributes {dimension_semantics = [#tpu.dimension_semantics<parallel>, #tpu.dimension_semantics<parallel>], iteration_bounds = array<i64: 2, 1>, scalar_prefetch = 0 : i64, scratch_operands = 0 : i64, tpu.core_type = #tpu.core_type<tc>, window_params = [{transform_indices = @transform_0, window_bounds = array<i64: 1, 4, 64>}, {transform_indices = @transform_1, window_bounds = array<i64: 1, 4, 64>}, {transform_indices = @transform_2, window_bounds = array<i64: 1, 1, 8, 128>}]} {
    %c0 = arith.constant 0 : index
    %c0_0 = arith.constant 0 : index
    %c0_1 = arith.constant 0 : index
    %0 = vector.load %arg2[%c0, %c0_0, %c0_1] : memref<1x4x64xf32, #tpu.memory_space<vmem>>, vector<1x4x64xf32>
    %1 = vector.shape_cast %0 : vector<1x4x64xf32> to vector<4x64xf32>
    %c0_2 = arith.constant 0 : index
    %c0_3 = arith.constant 0 : index
    %c0_4 = arith.constant 0 : index
    %2 = vector.load %arg3[%c0_2, %c0_3, %c0_4] : memref<1x4x64xf32, #tpu.memory_space<vmem>>, vector<1x4x64xf32>
    %3 = vector.shape_cast %2 : vector<1x4x64xf32> to vector<4x64xf32>
    %cst = arith.constant dense<0.000000e+00> : vector<64x64xf32>
    %4 = tpu.matmul %1, %1, %cst {dimension_numbers = #tpu.dot_dimension_numbers<[0], [0], [1], [1], [0, 1, 1, 1], [], []>} : vector<4x64xf32>, vector<4x64xf32>, vector<64x64xf32> -> vector<64x64xf32>
    %cst_5 = arith.constant dense<0.000000e+00> : vector<64x64xf32>
    %5 = tpu.matmul %3, %3, %cst_5 {dimension_numbers = #tpu.dot_dimension_numbers<[0], [0], [1], [1], [0, 1, 1, 1], [], []>} : vector<4x64xf32>, vector<4x64xf32>, vector<64x64xf32> -> vector<64x64xf32>
    %cst_6 = arith.constant dense<0xFF800000> : vector<64xf32>
    %6 = vector.multi_reduction <maximumf>, %4, %cst_6 [1] : vector<64x64xf32> to vector<64xf32>
    %7 = vector.shape_cast %6 : vector<64xf32> to vector<64x1xf32>
    %cst_7 = arith.constant dense<0xFF800000> : vector<64xf32>
    %8 = vector.multi_reduction <maximumf>, %5, %cst_7 [1] : vector<64x64xf32> to vector<64xf32>
    %9 = vector.shape_cast %8 : vector<64xf32> to vector<64x1xf32>
    %10 = vector.broadcast %7 : vector<64x1xf32> to vector<64x64xf32>
    %11 = arith.subf %4, %10 : vector<64x64xf32>
    %12 = vector.broadcast %9 : vector<64x1xf32> to vector<64x64xf32>
    %13 = arith.subf %5, %12 : vector<64x64xf32>
    %14 = math.exp %11 : vector<64x64xf32>
    %cst_8 = arith.constant dense<0.000000e+00> : vector<64xf32>
    %15 = vector.multi_reduction <add>, %14, %cst_8 [1] : vector<64x64xf32> to vector<64xf32>
    %16 = vector.shape_cast %15 : vector<64xf32> to vector<64x1xf32>
    %17 = math.exp %13 : vector<64x64xf32>
    %cst_9 = arith.constant dense<0.000000e+00> : vector<64xf32>
    %18 = vector.multi_reduction <add>, %17, %cst_9 [1] : vector<64x64xf32> to vector<64xf32>
    %19 = vector.shape_cast %18 : vector<64xf32> to vector<64x1xf32>
    %20 = arith.subf %13, %11 : vector<64x64xf32>
    %21 = arith.mulf %17, %20 : vector<64x64xf32>
    %cst_10 = arith.constant dense<0.000000e+00> : vector<64xf32>
    %22 = vector.multi_reduction <add>, %21, %cst_10 [1] : vector<64x64xf32> to vector<64xf32>
    %23 = vector.shape_cast %22 : vector<64xf32> to vector<64x1xf32>
    %24 = arith.divf %23, %19 : vector<64x1xf32>
    %25 = math.log %16 : vector<64x1xf32>
    %26 = arith.addf %24, %25 : vector<64x1xf32>
    %27 = math.log %19 : vector<64x1xf32>
    %28 = arith.subf %26, %27 : vector<64x1xf32>
    %29 = vector.shape_cast %28 : vector<64x1xf32> to vector<1x64x1xf32>
    %cst_11 = arith.constant dense<0.000000e+00> : vector<1xf32>
    %30 = vector.multi_reduction <add>, %29, %cst_11 [1, 2] : vector<1x64x1xf32> to vector<1xf32>
    %31 = vector.shape_cast %30 : vector<1xf32> to vector<1x1x1xf32>
    %32 = vector.extract %31[0, 0, 0] : f32 from vector<1x1x1xf32>
    %33 = vector.broadcast %32 : f32 to vector<1x1x8x128xf32>
    %c0_12 = arith.constant 0 : index
    %c0_13 = arith.constant 0 : index
    %c0_14 = arith.constant 0 : index
    %c0_15 = arith.constant 0 : index
    %34 = vector.load %arg4[%c0_12, %c0_13, %c0_14, %c0_15] : memref<1x1x8x128xf32, #tpu.memory_space<vmem>>, vector<1x1x8x128xf32>
    tpu.vector_store %arg4[%c0_12, %c0_13, %c0_14, %c0_15], %33 {strides = array<i32>} : memref<1x1x8x128xf32, #tpu.memory_space<vmem>>, vector<1x1x8x128xf32>,
    return
  }
  func.func @transform_0(%arg0: i32, %arg1: i32) -> (i32, i32, i32) {
    %c0_i32 = arith.constant 0 : i32
    %c0_i32_0 = arith.constant 0 : i32
    %c0_i32_1 = arith.constant 0 : i32
    return %arg0, %c0_i32, %c0_i32_0 : i32, i32, i32
  }
  func.func @transform_1(%arg0: i32, %arg1: i32) -> (i32, i32, i32) {
    %c0_i32 = arith.constant 0 : i32
    %c0_i32_0 = arith.constant 0 : i32
    %c0_i32_1 = arith.constant 0 : i32
    return %arg0, %c0_i32, %c0_i32_0 : i32, i32, i32
  }
  func.func @transform_2(%arg0: i32, %arg1: i32) -> (i32, i32, i32, i32) {
    %c0_i32 = arith.constant 0 : i32
    %c0_i32_0 = arith.constant 0 : i32
    %c0_i32_1 = arith.constant 0 : i32
    return %arg0, %arg1, %c0_i32, %c0_i32_0 : i32, i32, i32, i32
  }
}

</mosaic_0001>

<bundles_post_ra>
// kernel: criterion_pixel_pair.1
= control target key start
LH: loop header
LB: loop body
LE: loop exit
PB: predicated region body
PF: predicated region fallthrough
CT: control target
= control target key end

     0   :  { %s1087_s9 = smov 0   ;;  %s1089_s10 = smov 0   ;;  %s1234_s0 = inlined_call_operand.vmem [shape: f32[2,4,64], index: 0, kind: input, shape index: {}]   ;;  %s1235_s1 = inlined_call_operand.vmem [shape: f32[2,4,64], index: 1, kind: input, shape index: {}]   ;;  %s1236_s2 = inlined_call_operand.vmem [shape: f32[2,1,8,128], index: 2, kind: output, shape index: {}]  }
   0x1   :  { %s1091_s11 = smov 0  }
   0x2 LB: > { %s24_s12 = sadd.s32 1, %s1066_s10  ;;  %p871_p0 = scmp.ge.s32.totalorder %s1070_s11, 1  ;;  %s1070_s11 = sphi %s1091_s11, %s12_s11   ;;  %s1066_s10 = sphi %s1089_s10, %s1238_s10   ;;  %s1062_s9 = sphi %s1087_s9, %s1237_s9  }
   0x3   : > { %p26_p1 = scmp.ge.s32.totalorder %s24_s12, 2  ;;  %p134_p2 = scmp.lt.s32.totalorder %s1070_s11, 3 }
   0x5   : > { %s1240_s12 = smov (%p26_p1, %s24_s12), 0  ;;  %p135_p3 = pnand %p871_p0, %p134_p2 }
   0x6   : > { %p161_p4 = scmp.lt.s32.totalorder (!%p135_p3), %s1062_s9, 1  ;;  %vm235_vm0 = vcmask (!%p135_p3), 1043456   ;;  %vm210_vm1 = vcmask (!%p135_p3), 31744   ;;  %vm508_vm2 = vcmask (!%p135_p3), 523264   ;;  %vm757_vm3 = vcmask (!%p135_p3), 7168  }
   0x7   : > { %138 = sbr.rel (%p135_p3) target bundleno = 975 (0x3cf), region = 28 }
   0xe   : > { %s1242_s9 = smov (!%p161_p4, %s1062_s9), 1 }
   0xf   : > { %s872_s13 = sshll.u32 %s1242_s9, 2  ;;  %s874_s20 = sshll.u32 %s1242_s9, 3 }
  0x10   : > { %s164_s16 = scalar_lea.vmem %s1234_s0, %s872_s13  ;;  %s168_s19 = scalar_lea.vmem %s1235_s1, %s872_s13 }
  0x11   : > { %v176_v0 = vld [vmem:[%s164_s16] sm:$0xf]  ;;  %s175_s23 = scalar_lea.vmem %s1236_s2, %s874_s20 }
  0x12   : > { %178 = vxpose.xlu0.b32.start.end [1/1] (short) (narrow) %v176_v0, 64  ;;  %v177_v1 = vld [vmem:[%s168_s19] sm:$0xf]  ;;  %913 = vmatprep.subr.msk.mxu0 %vm235_vm0, %v176_v0 }
  0x13   : > { %927 = vmatprep.subr.msk.mxu1 %vm235_vm0, %v177_v1  ;;  %914 = vmatpush3.msk.msra.mxu0 %vm235_vm0, %v176_v0 }
  0x14   : > { %928 = vmatpush3.msk.msra.mxu1 %vm235_vm0, %v177_v1 }
  0x2f   : > { %344 = vxpose.xlu0.b32.start.end [1/1] (short) (narrow) %v177_v1, 64 }
  0x92   : > { %v194_v2 = vpop.trf.xlu0 }
  0x93   : > { %915 = vmatprep.mubr.msk.f32.mxu0 %vm210_vm1, %v194_v2 }
  0x96   : > { %v195_v3 = vpop.trf.xlu0 }
  0x97   : > { %916 = vmatmul.mubr.msk.f32.vlgmr.msra.gmra.mrb[0].mxu0 %vm210_vm1, %v195_v3 }
  0x9a   : > { %v196_v4 = vpop.trf.xlu0 }
  0x9b   : > { %918 = vmatprep.mubr.msk.f32.mxu0 %vm210_vm1, %v196_v4 }
  0x9e   : > { %v197_v5 = vpop.trf.xlu0 }
  0x9f   : > { %919 = vmatmul.mubr.msk.f32.gmra.mrb[2].mxu0 %vm210_vm1, %v197_v5 }
  0xa2   : > { %v198_v6 = vpop.trf.xlu0 }
  0xa3   : > { %921 = vmatprep.mubr.msk.f32.mxu0 %vm210_vm1, %v198_v6 }
  0xa6   : > { %v199_v7 = vpop.trf.xlu0 }
  0xa7   : > { %922 = vmatmul.mubr.msk.f32.gmra.mrb[4].mxu0 %vm210_vm1, %v199_v7 }
  0xaa   : > { %v200_v8 = vpop.trf.xlu0 }
  0xab   : > { %924 = vmatprep.mubr.msk.f32.mxu0 %vm210_vm1, %v200_v8 }
  0xae   : > { %v201_v9 = vpop.trf.xlu0 }
  0xaf   : > { %925 = vmatmul.mubr.msk.f32.gmra.mrb[6].mxu0 %vm210_vm1, %v201_v9 }
  0xb2   : > { %v360_v10 = vpop.trf.xlu0 }
  0xb3   : > { %929 = vmatprep.mubr.msk.f32.mxu1 %vm210_vm1, %v360_v10 }
  0xb6   : > { %v361_v11 = vpop.trf.xlu0 }
  0xb7   : > { %930 = vmatmul.mubr.msk.f32.vlgmr.msra.gmra.mrb[0].mxu1 %vm210_vm1, %v361_v11 }
  0xba   : > { %v362_v12 = vpop.trf.xlu0 }
  0xbb   : > { %932 = vmatprep.mubr.msk.f32.mxu1 %vm210_vm1, %v362_v12 }
  0xbe   : > { %v363_v13 = vpop.trf.xlu0 }
  0xbf   : > { %933 = vmatmul.mubr.msk.f32.gmra.mrb[2].mxu1 %vm210_vm1, %v363_v13 }
  0xc2   : > { %v364_v14 = vpop.trf.xlu0 }
  0xc3   : > { %935 = vmatprep.mubr.msk.f32.mxu1 %vm210_vm1, %v364_v14 }
  0xc6   : > { %v365_v15 = vpop.trf.xlu0 }
  0xc7   : > { %936 = vmatmul.mubr.msk.f32.gmra.mrb[4].mxu1 %vm210_vm1, %v365_v15 }
  0xca   : > { %v366_v16 = vpop.trf.xlu0 }
  0xcb   : > { %938 = vmatprep.mubr.msk.f32.mxu1 %vm210_vm1, %v366_v16 }
  0xce   : > { %v367_v17 = vpop.trf.xlu0 }
  0xcf   : > { %939 = vmatmul.mubr.msk.f32.gmra.mrb[6].mxu1 %vm210_vm1, %v367_v17 }
 0x16a   : > { %v917_v18 = vpop.f32.mrb[0].mxu0 }
 0x16b   : > { %v305_v19 = vpop.f32.mrb[1].mxu0  ;;  %v512_v20 = vsel %vm508_vm2, %v917_v18, -inf }
 0x16c   : > { %513 = vmax.xlane.f32.xlu1 %v512_v20  ;;  %v509_v30 = vsel %vm508_vm2, %v305_v19, -inf }
 0x172   : > { %v1131_v21 = vpop.f32.mrb[2].mxu0 }
 0x173   : > { %v1133_v22 = vpop.f32.mrb[3].mxu0  ;;  %v518_v34 = vsel %vm508_vm2, %v1131_v21, -inf }
 0x174   : > { %v515_v39 = vsel %vm508_vm2, %v1133_v22, -inf }
 0x17a   : > { %v1135_v23 = vpop.f32.mrb[4].mxu0 }
 0x17b   : > { %v1137_v24 = vpop.f32.mrb[5].mxu0  ;;  %v524_v44 = vsel %vm508_vm2, %v1135_v23, -inf }
 0x17c   : > { %v521_v43 = vsel %vm508_vm2, %v1137_v24, -inf }
 0x182   : > { %v1139_v25 = vpop.f32.mrb[6].mxu0 }
 0x183   : > { %v1141_v26 = vpop.f32.mrb[7].mxu0  ;;  %v530_v46 = vsel %vm508_vm2, %v1139_v25, -inf }
 0x184   : > { %v527_v47 = vsel %vm508_vm2, %v1141_v26, -inf }
 0x18a   : > { %v931_v27 = vpop.f32.mrb[0].mxu1 }
 0x18b   : > { %v469_v28 = vpop.f32.mrb[1].mxu1  ;;  %v536_v29 = vsel %vm508_vm2, %v931_v27, -inf }
 0x18c   : > { %537 = vmax.xlane.f32.xlu1 %v536_v29  ;;  %v533_v32 = vsel %vm508_vm2, %v469_v28, -inf }
 0x190   : > { %510 = vmax.xlane.f32.xlu1 %v509_v30 }
 0x192   : > { %v934_v31 = vpop.f32.mrb[2].mxu1 }
 0x193   : > { %v1146_v33 = vpop.f32.mrb[3].mxu1  ;;  %v542_v35 = vsel %vm508_vm2, %v934_v31, -inf }
 0x194   : > { %534 = vmax.xlane.f32.xlu1 %v533_v32  ;;  %v539_v41 = vsel %vm508_vm2, %v1146_v33, -inf }
 0x198   : > { %519 = vmax.xlane.f32.xlu1 %v518_v34 }
 0x19a   : > { %v1151_v36 = vpop.f32.mrb[4].mxu1 }
 0x19b   : > { %v489_v37 = vpop.f32.mrb[5].mxu1  ;;  %v548_v45 = vsel %vm508_vm2, %v1151_v36, -inf }
 0x19c   : > { %543 = vmax.xlane.f32.xlu1 %v542_v35  ;;  %v545_v38 = vsel %vm508_vm2, %v489_v37, -inf }
 0x19d   : > { %546 = vmax.xlane.f32.xlu0 %v545_v38 }
 0x1a0   : > { %516 = vmax.xlane.f32.xlu1 %v515_v39 }
 0x1a2   : > { %v1156_v40 = vpop.f32.mrb[6].mxu1 }
 0x1a3   : > { %v1160_v42 = vpop.f32.mrb[7].mxu1  ;;  %v554_v49 = vsel %vm508_vm2, %v1156_v40, -inf }
 0x1a4   : > { %540 = vmax.xlane.f32.xlu1 %v539_v41  ;;  %v551_v48 = vsel %vm508_vm2, %v1160_v42, -inf }
 0x1a8   : > { %522 = vmax.xlane.f32.xlu1 %v521_v43 }
 0x1ac   : > { %525 = vmax.xlane.f32.xlu1 %v524_v44 }
 0x1b0   : > { %549 = vmax.xlane.f32.xlu1 %v548_v45 }
 0x1b4   : > { %531 = vmax.xlane.f32.xlu1 %v530_v46 }
 0x1b8   : > { %528 = vmax.xlane.f32.xlu1 %v527_v47 }
 0x1bc   : > { %552 = vmax.xlane.f32.xlu1 %v551_v48 }
 0x1c0   : > { %555 = vmax.xlane.f32.xlu1 %v554_v49 }
 0x1f9   : > { %v514_v50 = vpop.xlane.xlu1 %513 }
 0x1fa   : > { %v558_v51 = vsub.f32 %v917_v18, %v514_v50 }
 0x1fc   : > { %v575_v52 = vmul.f32 1.442695, %v558_v51 }
 0x1fe   : > { %968 = vpow2.f32 %v575_v52 }
 0x208   : > { %v969_v53 = vpop.eup %968 }
 0x209   : > { %v592_v54 = vsel %vm508_vm2, %v969_v53, 0.0 }
 0x20a   : > { %593 = vadd.xlane.f32.xlu1 %v592_v54 }
 0x219   : > { %v538_v55 = vpop.xlane.xlu1 %537 }
 0x21a   : > { %v566_v56 = vsub.f32 %v931_v27, %v538_v55 }
 0x21c   : > { %v615_v57 = vmul.f32 1.442695, %v566_v56  ;;  %v654_v58 = vsub.f32 %v566_v56, %v558_v51 }
 0x21d   : > { %v511_v59 = vpop.xlane.xlu1 %510 }
 0x21e   : > { %970 = vpow2.f32 %v615_v57  ;;  %v557_v60 = vsub.f32 %v305_v19, %v511_v59 }
 0x220   : > { %v573_v61 = vmul.f32 1.442695, %v557_v60 }
 0x221   : > { %v535_v62 = vpop.xlane.xlu1 %534 }
 0x222   : > { %972 = vpow2.f32 %v573_v61  ;;  %v565_v63 = vsub.f32 %v469_v28, %v535_v62 }
 0x224   : > { %v613_v0 = vmul.f32 1.442695, %v565_v63  ;;  %v653_v1 = vsub.f32 %v565_v63, %v557_v60 }
 0x225   : > { %v520_v2 = vpop.xlane.xlu1 %519 }
 0x226   : > { %974 = vpow2.f32 %v613_v0  ;;  %v560_v3 = vsub.f32 %v1131_v21, %v520_v2 }
 0x228   : > { %v971_v4 = vpop.eup %970  ;;  %v579_v5 = vmul.f32 1.442695, %v560_v3 }
 0x229   : > { %v544_v6 = vpop.xlane.xlu1 %543  ;;  %v632_v7 = vsel %vm508_vm2, %v971_v4, 0.0  ;;  %v662_v8 = vmul.f32 %v971_v4, %v654_v58 }
 0x22a   : > { %v568_v9 = vsub.f32 %v934_v31, %v544_v6  ;;  %v547_v10 = vpop.xlane.xlu0 %546  ;;  %633 = vadd.xlane.f32.xlu1 %v632_v7  ;;  %976 = vpow2.f32 %v579_v5 }
 0x22b   : > { %v569_v11 = vsub.f32 %v489_v37, %v547_v10 }
 0x22c   : > { %v973_v12 = vpop.eup %972  ;;  %v619_v13 = vmul.f32 1.442695, %v568_v9  ;;  %v656_v14 = vsub.f32 %v568_v9, %v560_v3 }
 0x22d   : > { %v621_v15 = vmul.f32 1.442695, %v569_v11  ;;  %v517_v16 = vpop.xlane.xlu1 %516  ;;  %v589_v17 = vsel %vm508_vm2, %v973_v12, 0.0 }
 0x22e   : > { %978 = vpow2.f32 %v619_v13  ;;  %v559_v18 = vsub.f32 %v1133_v22, %v517_v16  ;;  %590 = vadd.xlane.f32.xlu1 %v589_v17  ;;  %v672_v22 = vsel %vm508_vm2, %v662_v8, 0.0 }
 0x22f   : > { %980 = vpow2.f32 %v621_v15 }
 0x230   : > { %v975_v19 = vpop.eup %974  ;;  %v577_v20 = vmul.f32 1.442695, %v559_v18 }
 0x231   : > { %v541_v21 = vpop.xlane.xlu1 %540  ;;  %v629_v27 = vsel %vm508_vm2, %v975_v19, 0.0  ;;  %v661_v28 = vmul.f32 %v975_v19, %v653_v1 }
 0x232   : > { %v567_v29 = vsub.f32 %v1146_v33, %v541_v21  ;;  %630 = vadd.xlane.f32.xlu1 %v629_v27  ;;  %982 = vpow2.f32 %v577_v20 }
 0x233   : > { %v669_v30 = vsel %vm508_vm2, %v661_v28, 0.0 }
 0x234   : > { %v617_v31 = vmul.f32 1.442695, %v567_v29  ;;  %v655_v32 = vsub.f32 %v567_v29, %v559_v18  ;;  %670 = vadd.xlane.f32.xlu0 %v669_v30  ;;  %v977_v35 = vpop.eup %976 }
 0x235   : > { %v523_v34 = vpop.xlane.xlu1 %522  ;;  %v598_v33 = vsel %vm508_vm2, %v977_v35, 0.0 }
 0x236   : > { %984 = vpow2.f32 %v617_v31  ;;  %v561_v37 = vsub.f32 %v1137_v24, %v523_v34  ;;  %673 = vadd.xlane.f32.xlu1 %v672_v22 }
 0x238   : > { %v979_v38 = vpop.eup %978  ;;  %v657_v39 = vsub.f32 %v569_v11, %v561_v37  ;;  %v581_v52 = vmul.f32 1.442695, %v561_v37 }
 0x239   : > { %v981_v41 = vpop.eup %980  ;;  %v526_v43 = vpop.xlane.xlu1 %525  ;;  %v1187_v44 = vmul.f32 %v979_v38, %v656_v14  ;;  %v638_v49 = vsel %vm508_vm2, %v979_v38, 0.0 }
 0x23a   : > { %v562_v45 = vsub.f32 %v1135_v23, %v526_v43  ;;  %599 = vadd.xlane.f32.xlu1 %v598_v33  ;;  %v665_v46 = vmul.f32 %v981_v41, %v657_v39  ;;  %v641_v13 = vsel %vm508_vm2, %v981_v41, 0.0 }
 0x23b   : > { %v678_v28 = vsel %vm508_vm2, %v1187_v44, 0.0 }
 0x23c   : > { %v583_v47 = vmul.f32 1.442695, %v562_v45  ;;  %v983_v50 = vpop.eup %982  ;;  %v681_v19 = vsel %vm508_vm2, %v665_v46, 0.0 }
 0x23d   : > { %v550_v48 = vpop.xlane.xlu1 %549  ;;  %v595_v56 = vsel %vm508_vm2, %v983_v50, 0.0 }
 0x23e   : > { %986 = vpow2.f32 %v583_v47  ;;  %v570_v24 = vsub.f32 %v1151_v36, %v550_v48  ;;  %639 = vadd.xlane.f32.xlu1 %v638_v49 }
 0x240   : > { %v985_v51 = vpop.eup %984  ;;  %v623_v53 = vmul.f32 1.442695, %v570_v24  ;;  %v658_v54 = vsub.f32 %v570_v24, %v562_v45 }
 0x241   : > { %v532_v55 = vpop.xlane.xlu1 %531  ;;  %v663_v57 = vmul.f32 %v985_v51, %v655_v32  ;;  %v635_v60 = vsel %vm508_vm2, %v985_v51, 0.0 }
 0x242   : > { %988 = vpow2.f32 %v623_v53  ;;  %v564_v23 = vsub.f32 %v1139_v25, %v532_v55  ;;  %596 = vadd.xlane.f32.xlu1 %v595_v56 }
 0x243   : > { %990 = vpow2.f32 %v581_v52 }
 0x244   : > { %v587_v58 = vmul.f32 1.442695, %v564_v23 }
 0x245   : > { %v529_v59 = vpop.xlane.xlu1 %528 }
 0x246   : > { %992 = vpow2.f32 %v587_v58  ;;  %v563_v36 = vsub.f32 %v1141_v26, %v529_v59  ;;  %636 = vadd.xlane.f32.xlu1 %v635_v60 }
 0x248   : > { %v987_v61 = vpop.eup %986  ;;  %v585_v62 = vmul.f32 1.442695, %v563_v36 }
 0x249   : > { %v553_v63 = vpop.xlane.xlu1 %552  ;;  %v604_v0 = vsel %vm508_vm2, %v987_v61, 0.0 }
 0x24a   : > { %994 = vpow2.f32 %v585_v62  ;;  %v571_v1 = vsub.f32 %v1160_v42, %v553_v63  ;;  %605 = vadd.xlane.f32.xlu1 %v604_v0 }
 0x24c   : > { %v989_v25 = vpop.eup %988  ;;  %v625_v2 = vmul.f32 1.442695, %v571_v1  ;;  %v659_v3 = vsub.f32 %v571_v1, %v563_v36 }
 0x24d   : > { %v556_v4 = vpop.xlane.xlu1 %555  ;;  %v644_v5 = vsel %vm508_vm2, %v989_v25, 0.0  ;;  %v666_v6 = vmul.f32 %v989_v25, %v658_v54  ;;  %v991_v7 = vpop.eup %990 }
 0x24e   : > { %996 = vpow2.f32 %v625_v2  ;;  %v572_v26 = vsub.f32 %v1156_v40, %v556_v4  ;;  %645 = vadd.xlane.f32.xlu1 %v644_v5  ;;  %v601_v42 = vsel %vm508_vm2, %v991_v7, 0.0  ;;  %v675_v40 = vsel %vm508_vm2, %v663_v57, 0.0 }
 0x24f   : > { %v684_v29 = vsel %vm508_vm2, %v666_v6, 0.0 }
 0x250   : > { %v993_v8 = vpop.eup %992  ;;  %v627_v9 = vmul.f32 1.442695, %v572_v26  ;;  %v660_v10 = vsub.f32 %v572_v26, %v564_v23 }
 0x251   : > { %v610_v11 = vsel %vm508_vm2, %v993_v8, 0.0 }
 0x252   : > { %998 = vpow2.f32 %v627_v9  ;;  %611 = vadd.xlane.f32.xlu0 %v610_v11  ;;  %602 = vadd.xlane.f32.xlu1 %v601_v42 }
 0x254   : > { %v995_v12 = vpop.eup %994 }
 0x255   : > { %v607_v14 = vsel %vm508_vm2, %v995_v12, 0.0 }
 0x256   : > { %642 = vadd.xlane.f32.xlu1 %v641_v13  ;;  %608 = vadd.xlane.f32.xlu0 %v607_v14 }
 0x258   : > { %v997_v15 = vpop.eup %996 }
 0x259   : > { %v647_v16 = vsel %vm508_vm2, %v997_v15, 0.0  ;;  %v667_v17 = vmul.f32 %v997_v15, %v659_v3 }
 0x25a   : > { %676 = vadd.xlane.f32.xlu0 %v675_v40  ;;  %648 = vadd.xlane.f32.xlu1 %v647_v16 }
 0x25b   : > { %v687_v27 = vsel %vm508_vm2, %v667_v17, 0.0 }
 0x25c   : > { %v999_v18 = vpop.eup %998 }
 0x25d   : > { %v650_v20 = vsel %vm508_vm2, %v999_v18, 0.0  ;;  %v668_v21 = vmul.f32 %v999_v18, %v660_v10 }
 0x25e   : > { %682 = vadd.xlane.f32.xlu0 %v681_v19  ;;  %651 = vadd.xlane.f32.xlu1 %v650_v20 }
 0x25f   : > { %v690_v30 = vsel %vm508_vm2, %v668_v21, 0.0 }
 0x262   : > { %688 = vadd.xlane.f32.xlu0 %v687_v27  ;;  %679 = vadd.xlane.f32.xlu1 %v678_v28 }
 0x266   : > { %685 = vadd.xlane.f32.xlu1 %v684_v29 }
 0x26a   : > { %691 = vadd.xlane.f32.xlu1 %v690_v30 }
 0x297   : > { %v594_v31 = vpop.xlane.xlu1 %593 }
 0x298   : > { %1000 = vlog2.f32 %v594_v31 }
 0x2a2   : > { %v1001_v45 = vpop.eup %1000 }
 0x2a3   : > { %v712_v59 = vmul.f32 0.6931472, %v1001_v45 }
 0x2b7   : > { %v634_v32 = vpop.xlane.xlu1 %633 }
 0x2bb   : > { %v591_v34 = vpop.xlane.xlu1 %590 }
 0x2bf   : > { %v631_v22 = vpop.xlane.xlu1 %630 }
 0x2c0   : > { %1002 = vrcp.f32 %v631_v22 }
 0x2c1   : > { %1004 = vrcp.f32 %v634_v32  ;;  %v671_v33 = vpop.xlane.xlu0 %670 }
 0x2c2   : > { %1006 = vlog2.f32 %v591_v34 }
 0x2c3   : > { %v674_v35 = vpop.xlane.xlu1 %673  ;;  %1008 = vlog2.f32 %v634_v32 }
 0x2c4   : > { %1010 = vlog2.f32 %v631_v22 }
 0x2c7   : > { %v600_v37 = vpop.xlane.xlu1 %599 }
 0x2ca   : > { %v1003_v48 = vpop.eup %1002 }
 0x2cb   : > { %v640_v38 = vpop.xlane.xlu1 %639  ;;  %v1005_v49 = vpop.eup %1004  ;;  %v694_v51 = vmul.f32 %v1003_v48, %v671_v33 }
 0x2cc   : > { %v1007_v50 = vpop.eup %1006  ;;  %v696_v57 = vmul.f32 %v1005_v49, %v674_v35 }
 0x2cd   : > { %v1009_v24 = vpop.eup %1008  ;;  %v710_v56 = vmul.f32 0.6931472, %v1007_v50 }
 0x2ce   : > { %v1011_v54 = vpop.eup %1010  ;;  %v726_v2 = vadd.f32 %v712_v59, %v696_v57  ;;  %v736_v6 = vmul.f32 0.6931472, %v1009_v24 }
 0x2cf   : > { %v597_v39 = vpop.xlane.xlu1 %596  ;;  %v725_v60 = vadd.f32 %v710_v56, %v694_v51  ;;  %v734_v25 = vmul.f32 0.6931472, %v1011_v54 }
 0x2d0   : > { %1012 = vlog2.f32 %v597_v39  ;;  %v750_v42 = vsub.f32 %v726_v2, %v736_v6 }
 0x2d1   : > { %1014 = vlog2.f32 %v600_v37  ;;  %v749_v7 = vsub.f32 %v725_v60, %v734_v25 }
 0x2d2   : > { %v759_v27 = vsel %vm757_vm3, %v750_v42, 0.0 }
 0x2d3   : > { %v637_v41 = vpop.xlane.xlu1 %636  ;;  %v758_v15 = vsel %vm757_vm3, %v749_v7, 0.0 }
 0x2d4   : > { %1016 = vrcp.f32 %v637_v41  ;;  %v760_v37 = vadd.f32 %v759_v27, %v758_v15 }
 0x2d5   : > { %1018 = vrcp.f32 %v640_v38 }
 0x2d6   : > { %1020 = vlog2.f32 %v637_v41 }
 0x2d7   : > { %v606_v43 = vpop.xlane.xlu1 %605  ;;  %1022 = vlog2.f32 %v640_v38 }
 0x2d8   : > { %1024 = vlog2.f32 %v606_v43 }
 0x2da   : > { %v1013_v55 = vpop.eup %1012 }
 0x2db   : > { %v646_v44 = vpop.xlane.xlu1 %645  ;;  %v1015_v23 = vpop.eup %1014  ;;  %v714_v63 = vmul.f32 0.6931472, %v1013_v55 }
 0x2dc   : > { %1026 = vrcp.f32 %v646_v44  ;;  %v716_v17 = vmul.f32 0.6931472, %v1015_v23 }
 0x2de   : > { %v1017_v58 = vpop.eup %1016 }
 0x2df   : > { %v612_v46 = vpop.xlane.xlu0 %611  ;;  %v603_v47 = vpop.xlane.xlu1 %602 }
 0x2e0   : > { %1028 = vlog2.f32 %v603_v47  ;;  %v1019_v62 = vpop.eup %1018 }
 0x2e1   : > { %v1021_v1 = vpop.eup %1020 }
 0x2e2   : > { %v1023_v3 = vpop.eup %1022  ;;  %v738_v9 = vmul.f32 0.6931472, %v1021_v1 }
 0x2e3   : > { %v609_v52 = vpop.xlane.xlu0 %608  ;;  %v643_v53 = vpop.xlane.xlu1 %642  ;;  %v740_v28 = vmul.f32 0.6931472, %v1023_v3 }
 0x2e4   : > { %1030 = vlog2.f32 %v609_v52  ;;  %v1025_v5 = vpop.eup %1024 }
 0x2e5   : > { %1032 = vrcp.f32 %v643_v53  ;;  %v720_v33 = vmul.f32 0.6931472, %v1025_v5 }
 0x2e6   : > { %1034 = vlog2.f32 %v643_v53  ;;  %v1027_v8 = vpop.eup %1026 }
 0x2e7   : > { %1036 = vlog2.f32 %v646_v44  ;;  %v677_v36 = vpop.xlane.xlu0 %676  ;;  %v649_v61 = vpop.xlane.xlu1 %648 }
 0x2e8   : > { %v698_v0 = vmul.f32 %v1017_v58, %v677_v36  ;;  %1038 = vrcp.f32 %v649_v61 }
 0x2e9   : > { %1040 = vlog2.f32 %v649_v61 }
 0x2ea   : > { %1042 = vlog2.f32 %v612_v46  ;;  %v727_v4 = vadd.f32 %v714_v63, %v698_v0  ;;  %v1029_v11 = vpop.eup %1028 }
 0x2eb   : > { %v652_v26 = vpop.xlane.xlu1 %651  ;;  %v683_v10 = vpop.xlane.xlu0 %682  ;;  %v718_v18 = vmul.f32 0.6931472, %v1029_v11 }
 0x2ec   : > { %1044 = vrcp.f32 %v652_v26  ;;  %v751_v13 = vsub.f32 %v727_v4, %v738_v9 }
 0x2ed   : > { %1046 = vlog2.f32 %v652_v26 }
 0x2ee   : > { %v1031_v12 = vpop.eup %1030  ;;  %v761_v31 = vsel %vm757_vm3, %v751_v13, 0.0 }
 0x2ef   : > { %v1033_v14 = vpop.eup %1032  ;;  %v680_v40 = vpop.xlane.xlu1 %679  ;;  %v722_v38 = vmul.f32 0.6931472, %v1031_v12  ;;  %v762_v47 = vadd.f32 %v761_v31, %v760_v37 }
 0x2f0   : > { %v1035_v16 = vpop.eup %1034  ;;  %v702_v19 = vmul.f32 %v1033_v14, %v683_v10  ;;  %v700_v20 = vmul.f32 %v1019_v62, %v680_v40  ;;  %v689_v34 = vpop.xlane.xlu0 %688 }
 0x2f1   : > { %v1037_v21 = vpop.eup %1036  ;;  %v742_v30 = vmul.f32 0.6931472, %v1035_v16 }
 0x2f2   : > { %v1039_v29 = vpop.eup %1038  ;;  %v729_v32 = vadd.f32 %v718_v18, %v702_v19  ;;  %v728_v22 = vadd.f32 %v716_v17, %v700_v20  ;;  %v744_v50 = vmul.f32 0.6931472, %v1037_v21 }
 0x2f3   : > { %v1041_v35 = vpop.eup %1040  ;;  %v706_v39 = vmul.f32 %v1039_v29, %v689_v34  ;;  %v686_v41 = vpop.xlane.xlu1 %685 }
 0x2f4   : > { %v1043_v43 = vpop.eup %1042  ;;  %v753_v44 = vsub.f32 %v729_v32, %v742_v30  ;;  %v752_v45 = vsub.f32 %v728_v22, %v740_v28  ;;  %v704_v46 = vmul.f32 %v1027_v8, %v686_v41  ;;  %v746_v24 = vmul.f32 0.6931472, %v1041_v35 }
 0x2f5   : > { %v731_v48 = vadd.f32 %v722_v38, %v706_v39  ;;  %v724_v54 = vmul.f32 0.6931472, %v1043_v43 }
 0x2f6   : > { %v1045_v49 = vpop.eup %1044  ;;  %v763_v51 = vsel %vm757_vm3, %v752_v45, 0.0  ;;  %v730_v52 = vadd.f32 %v720_v33, %v704_v46  ;;  %v765_v57 = vsel %vm757_vm3, %v753_v44, 0.0 }
 0x2f7   : > { %v1047_v53 = vpop.eup %1046  ;;  %v764_v55 = vadd.f32 %v763_v51, %v762_v47  ;;  %v692_v56 = vpop.xlane.xlu1 %691  ;;  %v755_v23 = vsub.f32 %v731_v48, %v746_v24 }
 0x2f8   : > { %v754_v58 = vsub.f32 %v730_v52, %v744_v50  ;;  %v708_v59 = vmul.f32 %v1045_v49, %v692_v56  ;;  %v748_v36 = vmul.f32 0.6931472, %v1047_v53 }
 0x2f9   : > { %v766_v60 = vadd.f32 %v765_v57, %v764_v55  ;;  %v769_v1 = vsel %vm757_vm3, %v755_v23, 0.0 }
 0x2fa   : > { %v732_v61 = vadd.f32 %v724_v54, %v708_v59  ;;  %v767_v62 = vsel %vm757_vm3, %v754_v58, 0.0 }
 0x2fb   : > { %v768_v63 = vadd.f32 %v767_v62, %v766_v60 }
 0x2fc   : > { %v756_v0 = vsub.f32 %v732_v61, %v748_v36 }
 0x2fd   : > { %v770_v25 = vadd.f32 %v769_v1, %v768_v63 }
 0x2fe   : > { %v771_v2 = vsel %vm757_vm3, %v756_v0, 0.0 }
 0x2ff   : > { %v772_v3 = vadd.f32 %v771_v2, %v770_v25 }
 0x301   : > { %773 = vadd.xlane.f32.xlu0 %v772_v3 }
 0x38e   : > { %v774_v4 = vpop.xlane.xlu0 %773 }
 0x38f   : > { %v775_v5 = vrot.slane %v774_v4, 4 }
 0x391   : > { %v776_v6 = vadd.f32 %v775_v5, %v774_v4 }
 0x393   : > { %v777_v7 = vrot.slane %v776_v6, 2 }
 0x395   : > { %v778_v26 = vadd.f32 %v777_v7, %v776_v6 }
 0x397   : > { %v779_v8 = vrot.slane %v778_v26, 1 }
 0x399   : > { %v780_v9 = vadd.f32 %v779_v8, %v778_v26 }
 0x39b   : > { %941 = vpush %v780_v9 }
 0x3cc   : > { %s942_s24 = spop %941 }
 0x3cd   : > { %v782_v10 = vstv %s942_s24 }
 0x3ce   : > { %783 = vst [vmem:[%s175_s23] sm:$0xff] %v782_v10 }
 0x3cf PF: > { %s12_s11 = sadd.s32 1, %s1070_s11   ;;  %s1237_s9 = smov %s1066_s10 }
 0x3d0   : > { %p9_p5 = scmp.ge.s32.totalorder %s12_s11, 4   ;;  %s1238_s10 = smov %s1240_s12 }
 0x3d2   :  { %11 = sbr.rel (!%p9_p5) target bundleno = 2 (0x2), region = 61 }

</bundles_post_ra>
